<compile_context>
chip_gen: v6e
topology: v6e:2x2x1
jax: 0.10.0
libtpu: 0.0.40
codegen_flags: <defaults>
</compile_context>

<pallas_src>
import jax
import jax.numpy as jnp
from jax.experimental import pallas as pl
from jax.experimental.pallas import tpu as pltpu

EPS = 1e-5
THRESHOLD = 1.0  # snn.Leaky default threshold


def _dense_layer_kernel(x_ref, w1_ref, b1_ref, sc2_ref, sh2_ref, w2_ref, b2_ref,
                        out_ref):
    """One grid step = Bt batch elements; NCL layout (channels on sublanes, L on lanes)."""
    bt = x_ref.shape[0]
    L = x_ref.shape[-1]

    # Resident per-step operands (hoisted out of the per-batch loop).
    w1 = w1_ref[...]                      # (C1, Cin)  BN1-folded 1x1-conv weight
    b1 = b1_ref[...]                      # (C1, 1)    folded bias (f32)
    w2m1 = w2_ref[0]                      # (G, C1)    tap l-1
    w2c = w2_ref[1]                       # (G, C1)    center tap
    w2p1 = w2_ref[2]                      # (G, C1)    tap l+1
    b2 = b2_ref[...]                      # (G, 1)
    z_on = sc2_ref[...] + sh2_ref[...]    # BN2 output value where spike == 1
    z_off = sh2_ref[...]                  # BN2 output value where spike == 0
    lane = None

    for b in range(bt):  # static unroll; bt is small (<= 8)
        x = x_ref[b]                                                     # (Cin, L)

        # BN1 folded into the 1x1 conv: single MXU matmul, f32 accumulation.
        y = jnp.dot(w1, x, preferred_element_type=jnp.float32) + b1      # (C1, L)

        # Leaky spike (single step from zero membrane): spike = (mem > threshold).
        # BN2 on a binary signal == per-channel select.
        s = y > THRESHOLD
        z = jnp.where(s, z_on, z_off).astype(w2c.dtype)                  # (C1, L)

        # Conv1d k=3, padding=1: three matmuls + lane shifts on the XLU.
        a0 = jnp.dot(w2m1, z, preferred_element_type=jnp.float32)        # (G, L)
        a1 = jnp.dot(w2c, z, preferred_element_type=jnp.float32)
        a2 = jnp.dot(w2p1, z, preferred_element_type=jnp.float32)
        if lane is None:
            lane = jax.lax.broadcasted_iota(jnp.int32, a1.shape, 1)
        # out[:, l] += a0[:, l-1]   (zero padding at l = 0)
        a0s = jnp.where(lane == 0, 0.0, pltpu.roll(a0, shift=1, axis=1))
        # out[:, l] += a2[:, l+1]   (zero padding at l = L-1); shift L-1 == -1 mod L
        a2s = jnp.where(lane == L - 1, 0.0, pltpu.roll(a2, shift=L - 1, axis=1))

        mem = a0s + a1 + a2s + b2
        out_ref[b] = (mem > THRESHOLD).astype(out_ref.dtype)


def _choose_batch_tile(B, bytes_per_batch, vmem_budget=6 * 1024 * 1024, max_bt=8):
    """Largest divisor of B that fits the VMEM budget; keep >=2 grid steps when B>=2
    so both v7x TensorCores (megacore) get work."""
    cap = max(1, min(max_bt, vmem_budget // max(bytes_per_batch, 1)))
    if B >= 2:
        cap = min(cap, max(1, B // 2))
    bt = 1
    for d in range(1, B + 1):
        if B % d == 0 and d <= cap:
            bt = d
    return bt


def dense_layer_forward(x, params, *, compute_dtype=jnp.float32,
                        out_dtype=jnp.bfloat16):
    """x: (B, Cin, L) NCL tensor or list of NCL tensors (concatenated over channels).

    compute_dtype: dtype of streamed activations / matmul weights (bf16 halves HBM
                   traffic; accumulation + thresholds stay f32 inside the kernel).
    out_dtype:     spike output dtype (0/1 is exact in bf16; default bf16 halves
                   writeback bytes).
    """
    if isinstance(x, (list, tuple)):
        x = jnp.concatenate(list(x), axis=1)
    B, Cin, L = x.shape
    C1 = params["w1_oik"].shape[0]        # bn_size * growth_rate
    G = params["w2_oik"].shape[0]         # growth_rate
    f32 = jnp.float32

    # ---- fold BN1 (eval running stats) into the k=1 conv (exact for kernel_size=1) ----
    scale1 = (params["g1"].astype(f32) * jax.lax.rsqrt(params["v1"].astype(f32) + EPS))
    shift1 = params["be1"].astype(f32) - params["m1"].astype(f32) * scale1
    w1 = params["w1_oik"][:, :, 0].astype(f32)                         # (C1, Cin)
    w1f = (w1 * scale1[None, :]).astype(compute_dtype)                 # (C1, Cin)
    b1f = (params["b1"].astype(f32) + w1 @ shift1).reshape(C1, 1)      # (C1, 1) f32

    # ---- BN2 on spikes -> per-channel affine (scale/shift), kept in f32 ----
    scale2 = (params["g2"].astype(f32) * jax.lax.rsqrt(params["v2"].astype(f32) + EPS))
    shift2 = params["be2"].astype(f32) - params["m2"].astype(f32) * scale2
    sc2 = scale2.reshape(C1, 1)
    sh2 = shift2.reshape(C1, 1)

    # conv2 weight as (3 taps, G, C1): each tap is an MXU LHS.
    w2 = jnp.transpose(params["w2_oik"], (2, 0, 1)).astype(compute_dtype)  # (3, G, C1)
    b2 = params["b2"].astype(f32).reshape(G, 1)

    x_c = x.astype(compute_dtype)          # NCL as-is: no layout transpose in HBM

    # ---- batch tile sized against a conservative VMEM budget (v7x: 64 MiB phys) ----
    x_isz = jnp.dtype(compute_dtype).itemsize
    o_isz = jnp.dtype(out_dtype).itemsize
    bytes_per_batch = (2 * (Cin * L * x_isz + G * L * o_isz)   # double-buffered I/O
                       + 8 * C1 * L * 4)                       # f32 intermediates
    Bt = _choose_batch_tile(B, bytes_per_batch)
    grid = (B // Bt,)

    def rep(shape):  # weights / per-channel params: whole array, resident every step
        return pl.BlockSpec(shape, lambda b: (0,) * len(shape))

    out = pl.pallas_call(
        _dense_layer_kernel,
        out_shape=jax.ShapeDtypeStruct((B, G, L), out_dtype),
        grid=grid,
        in_specs=[
            pl.BlockSpec((Bt, Cin, L), lambda b: (b, 0, 0)),
            rep((C1, Cin)), rep((C1, 1)), rep((C1, 1)), rep((C1, 1)),
            rep((3, G, C1)), rep((G, 1)),
        ],
        out_specs=pl.BlockSpec((Bt, G, L), lambda b: (b, 0, 0)),
        compiler_params=pltpu.CompilerParams(
            dimension_semantics=("parallel",),
            vmem_limit_bytes=32 * 1024 * 1024),
    )(x_c, w1f, b1f, sc2, sh2, w2, b2)
    return out


# ---------------- pure-JAX reference (NCL, PyTorch semantics) ----------------
def _conv1d_nchw(x, w, b, padding):
    out = jax.lax.conv_general_dilated(
        x, w, window_strides=(1,), padding=[(padding, padding)],
        dimension_numbers=("NCH", "OIH", "NCH"))
    return out + b[None, :, None]


def reference_forward(x, p):
    def bn(t, g, be, m, v):
        return ((t - m[None, :, None]) / jnp.sqrt(v[None, :, None] + EPS)
                * g[None, :, None] + be[None, :, None])
    y = bn(x, p["g1"], p["be1"], p["m1"], p["v1"])
    y = _conv1d_nchw(y, p["w1_oik"], p["b1"], 0)
    s = (y > THRESHOLD).astype(jnp.float32)
    z = bn(s, p["g2"], p["be2"], p["m2"], p["v2"])
    z = _conv1d_nchw(z, p["w2_oik"], p["b2"], 1)
    return (z > THRESHOLD).astype(jnp.float32)


if __name__ == "__main__":
    # Small shapes consistent with the module: 1D conv, NCL input.
    B, Cin, L = 2, 8, 16
    growth_rate, bn_size = 8, 4
    C1 = bn_size * growth_rate  # 32

    key = jax.random.PRNGKey(0)
    ks = jax.random.split(key, 16)

    params = {
        # BatchNorm1d(Cin): weight, bias, running_mean, running_var
        "g1": 1.0 + 0.1 * jax.random.normal(ks[0], (Cin,), jnp.float32),
        "be1": 0.1 * jax.random.normal(ks[1], (Cin,), jnp.float32),
        "m1": 0.1 * jax.random.normal(ks[2], (Cin,), jnp.float32),
        "v1": 1.0 + 0.1 * jnp.abs(jax.random.normal(ks[3], (Cin,), jnp.float32)),
        # Conv1d(Cin, C1, k=1, bias=True): weight (C1, Cin, 1)
        "w1_oik": 0.6 * jax.random.normal(ks[4], (C1, Cin, 1), jnp.float32),
        "b1": 0.1 * jax.random.normal(ks[5], (C1,), jnp.float32),
        # BatchNorm1d(C1)
        "g2": 1.0 + 0.1 * jax.random.normal(ks[6], (C1,), jnp.float32),
        "be2": 0.1 * jax.random.normal(ks[7], (C1,), jnp.float32),
        "m2": 0.1 * jax.random.normal(ks[8], (C1,), jnp.float32),
        "v2": 1.0 + 0.1 * jnp.abs(jax.random.normal(ks[9], (C1,), jnp.float32)),
        # Conv1d(C1, growth_rate, k=3, padding=1, bias=True): weight (G, C1, 3)
        "w2_oik": 0.4 * jax.random.normal(ks[10], (growth_rate, C1, 3), jnp.float32),
        "b2": 0.1 * jax.random.normal(ks[11], (growth_rate,), jnp.float32),
    }

    # Dense-layer input can also be a list of feature maps; exercise the concat path.
    x_parts = [jax.random.normal(ks[12], (B, Cin // 2, L), jnp.float32),
               jax.random.normal(ks[13], (B, Cin // 2, L), jnp.float32)]

    # f32 streaming path: must match the PyTorch-semantics reference exactly.
    out = dense_layer_forward(x_parts, params)           # spikes emitted as bf16 (exact)
    out = jax.block_until_ready(out)

    ref = reference_forward(jnp.concatenate(x_parts, axis=1), params)
    assert out.shape == (B, growth_rate, L)
    assert out.dtype == jnp.bfloat16
    assert jnp.allclose(out.astype(jnp.float32), ref, atol=1e-5), \
        "Pallas kernel mismatch vs JAX reference"

    # bf16 streaming path (halves HBM traffic); spikes stay exactly binary.
    out_bf16 = dense_layer_forward(x_parts, params, compute_dtype=jnp.bfloat16)
    out_bf16 = jax.block_until_ready(out_bf16)
    assert out_bf16.shape == (B, growth_rate, L)
    assert bool(jnp.all((out_bf16 == 0) | (out_bf16 == 1)))

    print("KERNEL_OK")
</pallas_src>

<mosaic_0001>
module attributes {stable_mosaic.version = 11 : i64} {
  func.func @_dense_layer_kernel(%arg0: i32, %arg1: memref<1x8x16xf32, #tpu.memory_space<vmem>>, %arg2: memref<32x8xf32, #tpu.memory_space<vmem>>, %arg3: memref<32x1xf32, #tpu.memory_space<vmem>>, %arg4: memref<32x1xf32, #tpu.memory_space<vmem>>, %arg5: memref<32x1xf32, #tpu.memory_space<vmem>>, %arg6: memref<3x8x32xf32, #tpu.memory_space<vmem>>, %arg7: memref<8x1xf32, #tpu.memory_space<vmem>>, %arg8: memref<1x8x16xbf16, #tpu.memory_space<vmem>>) attributes {dimension_semantics = [#tpu.dimension_semantics<parallel>], iteration_bounds = array<i64: 2>, scalar_prefetch = 0 : i64, scratch_operands = 0 : i64, tpu.core_type = #tpu.core_type<tc>, window_params = [{transform_indices = @transform_0, window_bounds = array<i64: 1, 8, 16>}, {pipeline_mode = #tpu.pipeline_mode<synchronous>, transform_indices = @transform_1, window_bounds = array<i64: 32, 8>}, {pipeline_mode = #tpu.pipeline_mode<synchronous>, transform_indices = @transform_2, window_bounds = array<i64: 32, 1>}, {pipeline_mode = #tpu.pipeline_mode<synchronous>, transform_indices = @transform_3, window_bounds = array<i64: 32, 1>}, {pipeline_mode = #tpu.pipeline_mode<synchronous>, transform_indices = @transform_4, window_bounds = array<i64: 32, 1>}, {pipeline_mode = #tpu.pipeline_mode<synchronous>, transform_indices = @transform_5, window_bounds = array<i64: 3, 8, 32>}, {pipeline_mode = #tpu.pipeline_mode<synchronous>, transform_indices = @transform_6, window_bounds = array<i64: 8, 1>}, {transform_indices = @transform_7, window_bounds = array<i64: 1, 8, 16>}]} {
    %c0 = arith.constant 0 : index
    %c0_0 = arith.constant 0 : index
    %0 = vector.load %arg2[%c0, %c0_0] : memref<32x8xf32, #tpu.memory_space<vmem>>, vector<32x8xf32>
    %c0_1 = arith.constant 0 : index
    %c0_2 = arith.constant 0 : index
    %1 = vector.load %arg3[%c0_1, %c0_2] : memref<32x1xf32, #tpu.memory_space<vmem>>, vector<32x1xf32>
    %c0_3 = arith.constant 0 : index
    %c0_4 = arith.constant 0 : index
    %c0_5 = arith.constant 0 : index
    %2 = vector.load %arg6[%c0_3, %c0_4, %c0_5] : memref<3x8x32xf32, #tpu.memory_space<vmem>>, vector<1x8x32xf32>
    %3 = vector.shape_cast %2 : vector<1x8x32xf32> to vector<8x32xf32>
    %c1 = arith.constant 1 : index
    %c0_6 = arith.constant 0 : index
    %c0_7 = arith.constant 0 : index
    %4 = vector.load %arg6[%c1, %c0_6, %c0_7] : memref<3x8x32xf32, #tpu.memory_space<vmem>>, vector<1x8x32xf32>
    %5 = vector.shape_cast %4 : vector<1x8x32xf32> to vector<8x32xf32>
    %c2 = arith.constant 2 : index
    %c0_8 = arith.constant 0 : index
    %c0_9 = arith.constant 0 : index
    %6 = vector.load %arg6[%c2, %c0_8, %c0_9] : memref<3x8x32xf32, #tpu.memory_space<vmem>>, vector<1x8x32xf32>
    %7 = vector.shape_cast %6 : vector<1x8x32xf32> to vector<8x32xf32>
    %c0_10 = arith.constant 0 : index
    %c0_11 = arith.constant 0 : index
    %8 = vector.load %arg7[%c0_10, %c0_11] : memref<8x1xf32, #tpu.memory_space<vmem>>, vector<8x1xf32>
    %c0_12 = arith.constant 0 : index
    %c0_13 = arith.constant 0 : index
    %9 = vector.load %arg4[%c0_12, %c0_13] : memref<32x1xf32, #tpu.memory_space<vmem>>, vector<32x1xf32>
    %c0_14 = arith.constant 0 : index
    %c0_15 = arith.constant 0 : index
    %10 = vector.load %arg5[%c0_14, %c0_15] : memref<32x1xf32, #tpu.memory_space<vmem>>, vector<32x1xf32>
    %11 = arith.addf %9, %10 : vector<32x1xf32>
    %c0_16 = arith.constant 0 : index
    %c0_17 = arith.constant 0 : index
    %12 = vector.load %arg5[%c0_16, %c0_17] : memref<32x1xf32, #tpu.memory_space<vmem>>, vector<32x1xf32>
    %c0_18 = arith.constant 0 : index
    %c0_19 = arith.constant 0 : index
    %c0_20 = arith.constant 0 : index
    %13 = vector.load %arg1[%c0_18, %c0_19, %c0_20] : memref<1x8x16xf32, #tpu.memory_space<vmem>>, vector<1x8x16xf32>
    %14 = vector.shape_cast %13 : vector<1x8x16xf32> to vector<8x16xf32>
    %cst = arith.constant dense<0.000000e+00> : vector<32x16xf32>
    %15 = tpu.matmul %0, %14, %cst {dimension_numbers = #tpu.dot_dimension_numbers<[1], [0], [0], [1], [0, 0, 1, 1], [], []>} : vector<32x8xf32>, vector<8x16xf32>, vector<32x16xf32> -> vector<32x16xf32>
    %16 = vector.broadcast %1 : vector<32x1xf32> to vector<32x16xf32>
    %17 = arith.addf %15, %16 : vector<32x16xf32>
    %cst_21 = arith.constant 1.000000e+00 : f32
    %18 = vector.broadcast %cst_21 : f32 to vector<32x16xf32>
    %19 = arith.cmpf ogt, %17, %18 : vector<32x16xf32>
    %20 = vector.shape_cast %11 : vector<32x1xf32> to vector<32x1xf32>
    %21 = vector.broadcast %20 : vector<32x1xf32> to vector<32x16xf32>
    %22 = vector.shape_cast %12 : vector<32x1xf32> to vector<32x1xf32>
    %23 = vector.broadcast %22 : vector<32x1xf32> to vector<32x16xf32>
    %24 = arith.select %19, %21, %23 : vector<32x16xi1>, vector<32x16xf32>
    %cst_22 = arith.constant dense<0.000000e+00> : vector<8x16xf32>
    %25 = tpu.matmul %3, %24, %cst_22 {dimension_numbers = #tpu.dot_dimension_numbers<[1], [0], [0], [1], [0, 0, 1, 1], [], []>} : vector<8x32xf32>, vector<32x16xf32>, vector<8x16xf32> -> vector<8x16xf32>
    %cst_23 = arith.constant dense<0.000000e+00> : vector<8x16xf32>
    %26 = tpu.matmul %5, %24, %cst_23 {dimension_numbers = #tpu.dot_dimension_numbers<[1], [0], [0], [1], [0, 0, 1, 1], [], []>} : vector<8x32xf32>, vector<32x16xf32>, vector<8x16xf32> -> vector<8x16xf32>
    %cst_24 = arith.constant dense<0.000000e+00> : vector<8x16xf32>
    %27 = tpu.matmul %7, %24, %cst_24 {dimension_numbers = #tpu.dot_dimension_numbers<[1], [0], [0], [1], [0, 0, 1, 1], [], []>} : vector<8x32xf32>, vector<32x16xf32>, vector<8x16xf32> -> vector<8x16xf32>
    %28 = tpu.iota {dimensions = array<i32: 1>} : vector<8x16xi32>
    %c0_i32 = arith.constant 0 : i32
    %29 = vector.broadcast %c0_i32 : i32 to vector<8x16xi32>
    %30 = arith.cmpi eq, %28, %29 : vector<8x16xi32>
    %c1_i32 = arith.constant 1 : i32
    %31 = tpu.dynamic_rotate %25 by %c1_i32 dim 1 : vector<8x16xf32>, i32 -> vector<8x16xf32>
    %cst_25 = arith.constant 0.000000e+00 : f32
    %32 = vector.broadcast %cst_25 : f32 to vector<8x16xf32>
    %33 = arith.select %30, %32, %31 : vector<8x16xi1>, vector<8x16xf32>
    %c15_i32 = arith.constant 15 : i32
    %34 = vector.broadcast %c15_i32 : i32 to vector<8x16xi32>
    %35 = arith.cmpi eq, %28, %34 : vector<8x16xi32>
    %c15_i32_26 = arith.constant 15 : i32
    %36 = tpu.dynamic_rotate %27 by %c15_i32_26 dim 1 : vector<8x16xf32>, i32 -> vector<8x16xf32>
    %cst_27 = arith.constant 0.000000e+00 : f32
    %37 = vector.broadcast %cst_27 : f32 to vector<8x16xf32>
    %38 = arith.select %35, %37, %36 : vector<8x16xi1>, vector<8x16xf32>
    %39 = arith.addf %33, %26 : vector<8x16xf32>
    %40 = arith.addf %39, %38 : vector<8x16xf32>
    %41 = vector.broadcast %8 : vector<8x1xf32> to vector<8x16xf32>
    %42 = arith.addf %40, %41 : vector<8x16xf32>
    %cst_28 = arith.constant 1.000000e+00 : f32
    %43 = vector.broadcast %cst_28 : f32 to vector<8x16xf32>
    %44 = arith.cmpf ogt, %42, %43 : vector<8x16xf32>
    %45 = arith.extui %44 : vector<8x16xi1> to vector<8x16xi32>
    %46 = arith.sitofp %45 : vector<8x16xi32> to vector<8x16xf32>
    %47 = arith.truncf %46 : vector<8x16xf32> to vector<8x16xbf16>
    %c0_29 = arith.constant 0 : index
    %c0_30 = arith.constant 0 : index
    %c0_31 = arith.constant 0 : index
    %48 = vector.load %arg8[%c0_29, %c0_30, %c0_31] : memref<1x8x16xbf16, #tpu.memory_space<vmem>>, vector<1x8x16xbf16>
    %49 = vector.shape_cast %48 : vector<1x8x16xbf16> to vector<8x16xbf16>
    %50 = vector.shape_cast %47 : vector<8x16xbf16> to vector<1x8x16xbf16>
    tpu.vector_store %arg8[%c0_29, %c0_30, %c0_31], %50 {strides = array<i32>} : memref<1x8x16xbf16, #tpu.memory_space<vmem>>, vector<1x8x16xbf16>,
    return
  }
  func.func @transform_0(%arg0: i32) -> (i32, i32, i32) {
    %c0_i32 = arith.constant 0 : i32
    %c0_i32_0 = arith.constant 0 : i32
    %c0_i32_1 = arith.constant 0 : i32
    return %arg0, %c0_i32, %c0_i32_0 : i32, i32, i32
  }
  func.func @transform_1(%arg0: i32) -> (i32, i32) {
    %c0_i32 = arith.constant 0 : i32
    %c0_i32_0 = arith.constant 0 : i32
    %c0_i32_1 = arith.constant 0 : i32
    return %c0_i32, %c0_i32_0 : i32, i32
  }
  func.func @transform_2(%arg0: i32) -> (i32, i32) {
    %c0_i32 = arith.constant 0 : i32
    %c0_i32_0 = arith.constant 0 : i32
    %c0_i32_1 = arith.constant 0 : i32
    return %c0_i32, %c0_i32_0 : i32, i32
  }
  func.func @transform_3(%arg0: i32) -> (i32, i32) {
    %c0_i32 = arith.constant 0 : i32
    %c0_i32_0 = arith.constant 0 : i32
    %c0_i32_1 = arith.constant 0 : i32
    return %c0_i32, %c0_i32_0 : i32, i32
  }
  func.func @transform_4(%arg0: i32) -> (i32, i32) {
    %c0_i32 = arith.constant 0 : i32
    %c0_i32_0 = arith.constant 0 : i32
    %c0_i32_1 = arith.constant 0 : i32
    return %c0_i32, %c0_i32_0 : i32, i32
  }
  func.func @transform_5(%arg0: i32) -> (i32, i32, i32) {
    %c0_i32 = arith.constant 0 : i32
    %c0_i32_0 = arith.constant 0 : i32
    %c0_i32_1 = arith.constant 0 : i32
    %c0_i32_2 = arith.constant 0 : i32
    return %c0_i32, %c0_i32_0, %c0_i32_1 : i32, i32, i32
  }
  func.func @transform_6(%arg0: i32) -> (i32, i32) {
    %c0_i32 = arith.constant 0 : i32
    %c0_i32_0 = arith.constant 0 : i32
    %c0_i32_1 = arith.constant 0 : i32
    return %c0_i32, %c0_i32_0 : i32, i32
  }
  func.func @transform_7(%arg0: i32) -> (i32, i32, i32) {
    %c0_i32 = arith.constant 0 : i32
    %c0_i32_0 = arith.constant 0 : i32
    %c0_i32_1 = arith.constant 0 : i32
    return %arg0, %c0_i32, %c0_i32_0 : i32, i32, i32
  }
}

</mosaic_0001>

<bundles_post_ra>
// kernel: tpu_custom_call.1
= control target key start
LH: loop header
LB: loop body
LE: loop exit
PB: predicated region body
PF: predicated region fallthrough
CT: control target
= control target key end

     0   :  { %12 = vsyncpa [#allocation3], 0  ;;  %s1215_s0 = inlined_call_operand.vmem [shape: f32[2,8,16], index: 0, kind: input, shape index: {}]   ;;  %s1216_s1 = inlined_call_operand.vmem [shape: f32[32,8], index: 1, kind: input, shape index: {}]   ;;  %s1217_s2 = inlined_call_operand.vmem [shape: f32[32,1], index: 2, kind: input, shape index: {}]   ;;  %s1218_s3 = inlined_call_operand.vmem [shape: f32[32,1], index: 3, kind: input, shape index: {}]   ;;  %s1219_s4 = inlined_call_operand.vmem [shape: f32[32,1], index: 4, kind: input, shape index: {}]   ;;  %s1220_s5 = inlined_call_operand.vmem [shape: f32[3,8,32], index: 5, kind: input, shape index: {}]   ;;  %s1221_s6 = inlined_call_operand.vmem [shape: f32[8,1], index: 6, kind: input, shape index: {}]   ;;  %s1222_s7 = inlined_call_operand.hbm [shape: bf16[2,8,16], index: 7, kind: output, shape index: {}]  }
   0x1   :  { %14 = vsyncpa [#allocation3 + $0x1], 0  ;;  %s1038_s24 = smov 0   ;;  %s1040_s25 = smov 0  }
   0x2   :  { %s1042_s26 = smov 0   ;;  %s1044_s27 = smov 0  }
   0x3 LB: > { %s1059_s28 = sadd.s32 4294967295, %s989_s27   ;;  %s801_s29 = sadd.s32 4294967294, %s989_s27   ;;  %s989_s27 = sphi %s1044_s27, %s1228_s27   ;;  %s985_s26 = sphi %s1042_s26, %s1227_s26   ;;  %s981_s25 = sphi %s1040_s25, %s1226_s25   ;;  %s977_s24 = sphi %s1038_s24, %s1225_s24  }
   0x4   : > { %s1063_s30 = sadd.s32 1, %s989_s27   ;;  %s179_s8 = sadd.s32 1, %s985_s26 }
   0x5   : > { %s176_s9 = ssub.s32 %s989_s27, %s1063_s30  ;;  %p189_p0 = scmp.ne.s32.totalorder %s985_s26, %s981_s25 }
   0x6   : > { %p177_p1 = scmp.eq.s32.totalorder %s176_s9, 0  ;;  %p190_p2 = scmp.eq.s32.totalorder %s1059_s28, 1 }
   0x7   : > { %p195_p3 = scmp.ne.s32.totalorder %s981_s25, %s977_s24  ;;  %p196_p4 = scmp.eq.s32.totalorder %s801_s29, 1 }
   0x8   : > { %s1074_s10 = scalar_select %p177_p1, %s985_s26, %s179_s8  }
   0x9   : > { %p1076_p5 = por %p190_p2, %p189_p0  ;;  %p1080_p6 = por %p196_p4, %p195_p3 }
   0xa   : > { %p804_p7 = scmp.ge.s32.totalorder %s989_s27, 1  ;;  %p239_p8 = scmp.lt.s32.totalorder %s989_s27, 3 }
   0xc   : > { %p240_p9 = pnand %p804_p7, %p239_p8 }
   0xd   : > { %p270_p10 = scmp.lt.s32.totalorder (!%p240_p9), %s1059_s28, 1  ;;  %s994_s9 = smov (!%p240_p9), 16  }
   0xe   : > { %243 = sbr.rel (%p240_p9) target bundleno = 804 (0x324), region = 48  ;;  %s995_s17 = smov (!%p240_p9), 113  }
   0xf   : > { %s996_s18 = smov (!%p240_p9), 127   ;;  %s818_s21 = sshll.u32 (!%p240_p9), %s1059_s28, 6 }
  0x13   : > { %v274_v0 = vld [vmem:[%s1216_s1] sm:$0xff]  ;;  %vm321_vm0 = vcmask 64512   ;;  %v991_v1 = vmov 0   ;;  %v291_v2 = vld [vmem:[%s1218_s3 + $0x18] sm:$0xff]  ;;  %s271_s19 = scalar_select %p270_p10, %s1059_s28, 1  ;;  %v280_v6 = vld [vmem:[%s1217_s2 + $0x10] sm:$0xff] }
  0x14   : > { %843 = vmatprep.mubr.msk.f32.mxu0 %vm321_vm0, %v274_v0  ;;  %928 = vset.pattern.permute.xlu1 %v991_v1  ;;  %v295_v3 = vld [vmem:[%s1219_s4 + $0x18] sm:$0xff]  ;;  %v290_v7 = vld [vmem:[%s1218_s3 + $0x10] sm:$0xff]  ;;  %v275_v10 = vld [vmem:[%s1216_s1 + $0x8] sm:$0xff]  ;;  %v992_v22 = vmov 0.0   ;;  %vm993_vm1 = vmmov 0   ;;  %vm467_vm6 = vcmask 261120  }
  0x15   : > { %927 = vset.pattern.permute.xlu0 %v991_v1  ;;  %v299_v4 = vadd.f32 %v295_v3, %v291_v2  ;;  %v281_v5 = vld [vmem:[%s1217_s2 + $0x18] sm:$0xff]  ;;  %s806_s22 = sshll.u32 %s271_s19, 3  ;;  %v294_v8 = vld [vmem:[%s1219_s4 + $0x10] sm:$0xff]  ;;  %v279_v13 = vld [vmem:[%s1217_s2 + $0x8] sm:$0xff]  ;;  %849 = vmatprep.subr.mxu1 %v992_v22  ;;  %vm690_vm7 = vcmask 1047680   ;;  %v687_v1 = vlaneseq  ;;  %s267_s19 = sand.u32 1, %s981_s25  }
  0x16   : > { %318 = vperm.xlu0 %927, %v281_v5   ;;  %s273_s13 = scalar_lea.vmem %s1215_s0, %s806_s22  ;;  %v276_v11 = vld [vmem:[%s1216_s1 + $0x10] sm:$0xff]  ;;  %v298_v12 = vadd.f32 %v294_v8, %v290_v7  ;;  %v277_v14 = vld [vmem:[%s1216_s1 + $0x18] sm:$0xff]  ;;  %v289_v15 = vld [vmem:[%s1218_s3 + $0x8] sm:$0xff]  ;;  %857 = vmatprep.mubr.msk.f32.mxu1 %vm993_vm1, %v992_v22  ;;  %s805_s20 = sshll.u32 %s267_s19, 2  ;;  %vm726_vm11 = vcmask 125952  }
  0x17   : > { %440 = vperm.xlu1 %928, %v299_v4   ;;  %v300_v9 = vld [vmem:[%s273_s13] sm:$0xff]  ;;  %v293_v16 = vld [vmem:[%s1219_s4 + $0x8] sm:$0xff]  ;;  %v808_v48 = vld [vmem:[%s1220_s5 + $0x10] sm:$0xff]  ;;  %v688_v2 = vand.u32 127, %v687_v1  ;;  %s269_s22 = scalar_lea.vmem [#allocation2], %s805_s20  ;;  %s729_s13 = scalar_lea.sflag [#allocation3], %s267_s19 }
  0x18   : > { %841 = vmatprep.subr.mxu0 %v300_v9  ;;  %v278_v17 = vld [vmem:[%s1217_s2] sm:$0xff]  ;;  %v297_v18 = vadd.f32 %v293_v16, %v289_v15  ;;  %v807_v50 = vld [vmem:[%s1220_s5 + $0x8] sm:$0xff]  ;;  %s742_s23 = sshll.u32 %s269_s22, 4  ;;  %s997_s28 = smov [#allocation2]   ;;  %s743_s23 = int_to_ptr.vmem [resolvable:$true] %s742_s23 }
  0x19   : > { %842 = vmatpush3.msra.mxu0 %v300_v9  ;;  %v288_v19 = vld [vmem:[%s1218_s3] sm:$0xff]  ;;  %vm689_vm8 = vcmp.eq.s32.totalorder %v688_v2, 0  ;;  %vm702_vm9 = vcmp.eq.s32.totalorder %v688_v2, 15  ;;  %s929_s14 = scalar_lea.vmem %s743_s23, 64  ;;  %s933_s15 = sshll.u32 %s997_s28, 4  ;;  %s934_s15 = int_to_ptr.vmem [resolvable:$false] %s933_s15 }
  0x1a   : > { %313 = vperm.xlu0 %927, %v280_v6   ;;  %844 = vmatmul.mubr.msk.f32.vlgmr.msra.gmra.mxu0 %vm321_vm0, %v275_v10  ;;  %v292_v20 = vld [vmem:[%s1219_s4] sm:$0xff]  ;;  %p930_p11 = scmp.ne.s32.totalorder %s743_s23, %s929_s14  ;;  %s935_s16 = scalar_lea.vmem %s934_s15, 128 }
  0x1b   : > { %460 = vperm.xlu1 %928, %v295_v3   ;;  %846 = vmatprep.mubr.msk.f32.mxu0 %vm321_vm0, %v276_v11  ;;  %v296_v21 = vadd.f32 %v292_v20, %v288_v19  ;;  %v282_v46 = vld [vmem:[%s1220_s5] sm:$0xff]  ;;  %p936_p0 = scmp.lt.s32.totalorder %s743_s23, %s934_s15  ;;  %p937_p1 = scmp.lt.s32.totalorder %s935_s16, %s929_s14 }
  0x1c   : > { %860 = vmatprep.subr.mxu0 %v992_v22  ;;  %v287_v58 = vld [vmem:[%s1221_s6] sm:$0xff]  ;;  %p931_p12 = pnand %p930_p11, %p1076_p5 }
  0x1d   : > { %p938_p2 = por %p937_p1, %p936_p0 }
  0x1e   : > { %308 = vperm.xlu0 %927, %v279_v13   ;;  %847 = vmatmul.mubr.msk.f32.gmra.mxu0 %vm321_vm0, %v277_v14  ;;  %p932_p13 = pneg %p931_p12 }
  0x1f   : > { %435 = vperm.xlu1 %928, %v298_v12   ;;  %868 = vmatprep.mubr.msk.f32.mxu0 %vm993_vm1, %v992_v22 }
  0x20   : > { %p939_p3 = pnand %p938_p2, %p932_p13 }
  0x22   : > { %455 = vperm.xlu0 %927, %v294_v8  }
  0x23   : > { %303 = vperm.xlu1 %928, %v278_v17  }
  0x26   : > { %430 = vperm.xlu0 %927, %v297_v18  }
  0x27   : > { %450 = vperm.xlu1 %928, %v293_v16  }
  0x2a   : > { %425 = vperm.xlu0 %927, %v296_v21  }
  0x2b   : > { %445 = vperm.xlu1 %928, %v292_v20  }
  0x91   : > { %v319_v24 = vpop.permute.xlu0 %318 }
  0x92   : > { %v441_v23 = vpop.permute.xlu1 %440 }
  0x95   : > { %v314_v26 = vpop.permute.xlu0 %313 }
  0x96   : > { %v461_v25 = vpop.permute.xlu1 %460 }
  0x99   : > { %v309_v28 = vpop.permute.xlu0 %308 }
  0x9a   : > { %v436_v27 = vpop.permute.xlu1 %435 }
  0x9d   : > { %v456_v30 = vpop.permute.xlu0 %455 }
  0x9e   : > { %v304_v31 = vpop.permute.xlu1 %303 }
  0xa1   : > { %v431_v37 = vpop.permute.xlu0 %430 }
  0xa2   : > { %v451_v38 = vpop.permute.xlu1 %450 }
  0xa5   : > { %v426_v44 = vpop.permute.xlu0 %425 }
  0xa6   : > { %v446_v45 = vpop.permute.xlu1 %445 }
  0xda   : > { %v845_v29 = vpop.f32.mrf.mxu0 }
  0xdb   : > { %v406_v34 = vadd.f32 %v845_v29, %v309_v28 }
  0xdc   : > { %v400_v32 = vpop.f32.mrf.mxu0 }
  0xdd   : > { %v401_v39 = vadd.f32 %v400_v32, %v304_v31  ;;  %vm420_vm3 = vcmp.gt.f32.partialorder %v406_v34, 1.0 }
  0xde   : > { %v848_v33 = vpop.f32.mrf.mxu0  ;;  %v464_v43 = vsel %vm420_vm3, %v431_v37, %v451_v38 }
  0xdf   : > { %v416_v35 = vadd.f32 %v848_v33, %v319_v24  ;;  %vm419_vm5 = vcmp.gt.f32.partialorder %v401_v39, 1.0 }
  0xe0   : > { %v410_v36 = vpop.f32.mrf.mxu0  ;;  %v463_v47 = vsel %vm419_vm5, %v426_v44, %v446_v45 }
  0xe1   : > { %vm422_vm2 = vcmp.gt.f32.partialorder %v416_v35, 1.0  ;;  %v411_v40 = vadd.f32 %v410_v36, %v314_v26 }
  0xe2   : > { %v466_v41 = vsel %vm422_vm2, %v441_v23, %v461_v25 }
  0xe3   : > { %vm421_vm4 = vcmp.gt.f32.partialorder %v411_v40, 1.0  ;;  %850 = vmatpush3.msra.mxu1 %v466_v41  ;;  %861 = vmatpush3.msra.mxu0 %v466_v41 }
  0xe4   : > { %851 = vmatprep.subr.mxu1 %v992_v22  ;;  %862 = vmatprep.subr.mxu0 %v992_v22  ;;  %v465_v42 = vsel %vm421_vm4, %v436_v27, %v456_v30 }
  0xe5   : > { %852 = vmatpush3.msra.mxu1 %v465_v42  ;;  %863 = vmatpush3.msra.mxu0 %v465_v42 }
  0xe6   : > { %853 = vmatprep.subr.mxu1 %v992_v22  ;;  %864 = vmatprep.subr.mxu0 %v992_v22 }
  0xe7   : > { %854 = vmatpush3.msra.mxu1 %v464_v43  ;;  %865 = vmatpush3.msra.mxu0 %v464_v43 }
  0xe8   : > { %855 = vmatprep.subr.mxu1 %v992_v22  ;;  %866 = vmatprep.subr.mxu0 %v992_v22 }
  0xe9   : > { %856 = vmatpush3.msra.mxu1 %v463_v47  ;;  %867 = vmatpush3.msra.mxu0 %v463_v47 }
  0xea   : > { %858 = vmatmul.mubr.msk.f32.vlgmr.msra.gmra.mxu1 %vm467_vm6, %v282_v46  ;;  %871 = vmatprep.subr.mxu1 %v992_v22 }
  0xeb   : > { %872 = vmatpush3.msra.mxu1 %v466_v41  ;;  %879 = vmatprep.mubr.msk.f32.mxu1 %vm993_vm1, %v992_v22 }
  0xec   : > { %873 = vmatprep.subr.mxu1 %v992_v22  ;;  %869 = vmatmul.mubr.msk.f32.vlgmr.msra.gmra.mxu0 %vm467_vm6, %v807_v50 }
  0xed   : > { %874 = vmatpush3.msra.mxu1 %v465_v42 }
  0xee   : > { %875 = vmatprep.subr.mxu1 %v992_v22 }
  0xef   : > { %876 = vmatpush3.msra.mxu1 %v464_v43 }
  0xf0   : > { %877 = vmatprep.subr.mxu1 %v992_v22 }
  0xf1   : > { %878 = vmatpush3.msra.mxu1 %v463_v47 }
  0xf2   : > { %880 = vmatmul.mubr.msk.f32.vlgmr.msra.gmra.mxu1 %vm467_vm6, %v808_v48 }
 0x1aa   : > { %v537_v49 = vpop.f32.mrf.mxu1 }
 0x1ab   : > { %691 = vrot.lane.b32.xlu0 %v537_v49, %s994_s9 }
 0x1ac   : > { %v859_v51 = vpop.f32.mrf.mxu1  ;;  %v610_v59 = vpop.f32.mrf.mxu0 }
 0x1ae   : > { %v870_v60 = vpop.f32.mrf.mxu0 }
 0x1b2   : > { %v683_v52 = vpop.f32.mrf.mxu1 }
 0x1b3   : > { %703 = vrot.lane.b32.xlu1 %v683_v52, %s994_s9 }
 0x1b4   : > { %v881_v53 = vpop.f32.mrf.mxu1 }
 0x21d   : > { %v692_v54 = vpop.permute.xlu0 %691 }
 0x21e   : > { %v693_v55 = vsel %vm690_vm7, %v692_v54, %v537_v49 }
 0x21f   : > { %694 = vrot.lane.b32.xlu0 %v693_v55, %s994_s9 }
 0x225   : > { %v704_v56 = vpop.permute.xlu1 %703 }
 0x226   : > { %v705_v57 = vsel %vm690_vm7, %v704_v56, %v683_v52 }
 0x227   : > { %706 = vrot.lane.b32.xlu1 %v705_v57, %s994_s9  ;;  %s740_s9 = scalar_lea.hbm %s1222_s7, %s818_s21 }
 0x22b   : > { %718 = vperm.xlu1 %928, %v287_v58  }
 0x291   : > { %v695_v61 = vpop.permute.xlu0 %694 }
 0x292   : > { %v696_v62 = vsel %vm690_vm7, %v695_v61, %v537_v49 }
 0x293   : > { %698 = vrot.lane.b32.xlu0 %v696_v62, %s995_s17 }
 0x299   : > { %v707_v63 = vpop.permute.xlu1 %706 }
 0x29a   : > { %v708_v0 = vsel %vm690_vm7, %v707_v63, %v683_v52 }
 0x29b   : > { %710 = vrot.lane.b32.xlu0 %v708_v0, %s996_s18 }
 0x2a6   : > { %v719_v9 = vpop.permute.xlu1 %718 }
 0x305   : > { %v699_v3 = vpop.permute.xlu0 %698 }
 0x306   : > { %v701_v4 = vsel %vm689_vm8, 0.0, %v699_v3 }
 0x307   : > { %v714_v5 = vadd.f32 %v701_v4, %v610_v59 }
 0x30d   : > { %v711_v6 = vpop.permute.xlu0 %710 }
 0x30e   : > { %v713_v7 = vsel %vm702_vm9, 0.0, %v711_v6 }
 0x30f   : > { %v715_v8 = vadd.f32 %v714_v5, %v713_v7 }
 0x311   : > { %v721_v10 = vadd.f32 %v719_v9, %v715_v8 }
 0x313   : > { %vm722_vm10 = vcmp.gt.f32.partialorder %v721_v10, 1.0 }
 0x314   : > { %v816_v11 = vsel %vm722_vm10, 1.0, %v992_v22 }
 0x315   : > { %v725_v12 = vpack.c.bf16 %v816_v11, %v816_v11 }
 0x317   : > { %727 = vst.msk [vmem:[%s269_s22] sm:$0xf] %vm726_vm11, %v725_v12 }
 0x318   : > { %942 = shalt.err (!%p939_p3)
}
 0x319   : > { %s943_s17 = scalar_lea.hbm %s740_s9, 64  ;;  %s947_s20 = scalar_lea.hbm %s1222_s7, 128 }
 0x31a   : > { %p944_p4 = scmp.ne.s32.totalorder %s740_s9, %s943_s17  ;;  %p948_p9 = scmp.lt.s32.totalorder %s740_s9, %s1222_s7 }
 0x31b   : > { %p949_p10 = scmp.lt.s32.totalorder %s947_s20, %s943_s17 }
 0x31c   : > { %p945_p7 = pnand %p944_p4, %p1076_p5 }
 0x31d   : > { %p950_p11 = por %p949_p10, %p948_p9 }
 0x31e   : > { %p946_p8 = pneg %p945_p7 }
 0x320   : > { %p951_p12 = pnand %p950_p11, %p946_p8 }
 0x322   : > { %954 = shalt.err (!%p951_p12)
}
 0x323   : > { %882 = dma.vmem_to_hbm [thread:$0]  (%p1076_p5), %s743_s23, 64, %s740_s9, %s729_s13  }
 0x324 PF: > { %p888_p13 = scmp.ge.s32.totalorder %s989_s27, 2  ;;  %s754_s29 = sand.u32 1, %s977_s24  }
 0x325   : > { %s755_s8 = scalar_lea.sflag [#allocation3], %s754_s29 }
 0x326   : > { %p885_p0 = pnand %p888_p13, %p1080_p6 }
 0x328   : > { %p886_p1 = pneg %p885_p0 }
 0x32a   : > { %972 = dma.done.wait (%p886_p1), %s755_s8, 64  }
 0x32b   : > { %974 = vsyncadd (%p886_p1), %s755_s8, 4294967232  ;;  %p17_p2 = scmp.ge.s32.totalorder %s1063_s30, 4   ;;  %s1225_s24 = smov %s981_s25 }
 0x32c   : > { %s1226_s25 = smov %s985_s26  ;;  %s1227_s26 = smov %s1074_s10 }
 0x32d   : > { %s1228_s27 = smov %s1063_s30  ;;  %19 = sbr.rel (!%p17_p2) target bundleno = 3 (0x3), region = 85 }
 0x332   :  { %760 = vsyncpa [#allocation3], 1 }
 0x333   :  { %762 = vsyncpa [#allocation3 + $0x1], 1 }

</bundles_post_ra>
